<compile_context>
chip_gen: v7x
topology: tpu7x:2x2x1
jax: 0.10.0
libtpu: 0.0.40
codegen_flags: <defaults>
</compile_context>

<pallas_src>
import jax
import jax.numpy as jnp
from jax.experimental import pallas as pl
from jax.experimental.pallas import tpu as pltpu


def _lstm_noforget_kernel(xaug_ref, wxb_ref, wh_ref, wout_ref, bout_ref,
                          out_ref, pre_ref):
    """Whole recurrence in one kernel invocation (everything fits in VMEM).

    xaug_ref: (seq, I+1)   x with a trailing ones column
    wxb_ref:  (I+1, 3H)    fused [0.5*Wxi | Wxg | 0.5*Wxo] with fused-bias row
    wh_ref:   (H, 3H)      fused [0.5*Whi | Whg | 0.5*Who]
    wout_ref: (H, O), bout_ref: (1, O)
    out_ref:  (1, O)       output_layer(h_T) of the final timestep
    pre_ref:  (seq, 3H)    VMEM scratch holding the hoisted x-projection
    """
    seq_len = xaug_ref.shape[0]
    hidden = wh_ref.shape[0]

    # Hoisted input projection (+ bias via the ones column) for all timesteps:
    # one MXU matmul replaces 3*seq tiny matmuls + 3*seq bias adds on the
    # serial critical path.  i/o columns are pre-scaled by 0.5 (see wrapper).
    pre_ref[...] = jnp.dot(xaug_ref[...], wxb_ref[...],
                           preferred_element_type=jnp.float32)

    wh = wh_ref[...]   # load the fused recurrent weight once

    h_t = None
    # Fully unrolled recurrence (seq_len is a small static trace-time int).
    for t in range(seq_len):
        pre_row = pre_ref[t:t + 1, :]                  # (1, 3H) static slice
        if t == 0:
            pre = pre_row                              # h_0 == 0: skip matmul
        else:
            # Single recurrent matmul per step: (1, H) @ (H, 3H) -> (1, 3H).
            pre = pre_row + jnp.dot(h_t, wh,
                                    preferred_element_type=jnp.float32)

        # One EUP push over the full (1, 3H) vreg.  Because the i/o lanes were
        # scaled by 0.5, sigmoid(z) == 0.5*tanh(z/2) + 0.5 is exact here.
        t_all = jnp.tanh(pre)
        i_t = 0.5 * t_all[:, :hidden] + 0.5            # sigmoid(z_i)  (VPU)
        g_t = t_all[:, hidden:2 * hidden]              # tanh(z_g)
        o_t = 0.5 * t_all[:, 2 * hidden:] + 0.5        # sigmoid(z_o)  (VPU)
        c_t = i_t * g_t                                # no forget gate / carry
        h_t = o_t * jnp.tanh(c_t)                      # 2nd (unavoidable) tanh

    out_ref[...] = (jnp.dot(h_t, wout_ref[...],
                            preferred_element_type=jnp.float32)
                    + bout_ref[...])


def pack_params(params):
    """One-time parameter packing (do NOT call per forward).

    Fuses gate weights/biases along the output dim as [i | g | o], pre-scales
    the i/o columns by 0.5 (single-tanh activation trick) and folds the fused
    bias into the x-projection weight as an extra row.
    """
    half = jnp.float32(0.5)
    wx = jnp.concatenate(
        [half * params["wxi"], params["wxg"], half * params["wxo"]], axis=1)
    wh = jnp.concatenate(
        [half * params["whi"], params["whg"], half * params["who"]], axis=1)
    b = jnp.concatenate(
        [half * params["bi"], params["bg"], half * params["bo"]], axis=1)
    wxb = jnp.concatenate([wx, b], axis=0)             # (I+1, 3H)
    return {
        "wxb": wxb.astype(jnp.float32),
        "wh": wh.astype(jnp.float32),
        "wout": params["wout"].astype(jnp.float32),
        "bout": params["bout"].astype(jnp.float32),
    }


def lstm_noforget2_forward(x, hidden, packed):
    """x: (1, seq, input_size). hidden passed through untouched (as in torch).

    Returns (output, hidden) with output shape (1, output_size).
    Call through jax.jit so the small wrapper ops fuse away.
    """
    assert x.shape[0] == 1, "module semantics require batch size 1"
    seq, input_size = x.shape[1], x.shape[2]
    three_h = packed["wh"].shape[1]
    output_size = packed["wout"].shape[1]

    x2d = x.reshape(seq, input_size).astype(jnp.float32)
    # Ones column -> bias is folded into the hoisted projection matmul.
    x_aug = jnp.concatenate([x2d, jnp.ones((seq, 1), jnp.float32)], axis=1)

    vmem_spec = pl.BlockSpec(memory_space=pltpu.MemorySpace.VMEM)
    out = pl.pallas_call(
        _lstm_noforget_kernel,
        out_shape=jax.ShapeDtypeStruct((1, output_size), jnp.float32),
        in_specs=[vmem_spec] * 5,
        out_specs=vmem_spec,
        scratch_shapes=[pltpu.VMEM((seq, three_h), jnp.float32)],
    )(x_aug, packed["wxb"], packed["wh"], packed["wout"], packed["bout"])

    # NOTE: total resident data is <100 KiB, far below even v7x's 64 MiB VMEM,
    # so no streaming/tiling is needed; the workload is serial-latency-bound.
    return out, hidden


def _make_params(key, input_size, hidden_size, output_size):
    """Deterministic synthetic params (shapes match nn.Linear definitions)."""
    keys = jax.random.split(key, 4)

    def lin(k, fan_in, fan_out):
        bound = 1.0 / jnp.sqrt(jnp.float32(fan_in))
        kw, kb = jax.random.split(k)
        w = jax.random.uniform(kw, (fan_in, fan_out), jnp.float32, -bound, bound)
        b = jax.random.uniform(kb, (1, fan_out), jnp.float32, -bound, bound)
        return w, b

    combined = input_size + hidden_size
    wi, bi = lin(keys[0], combined, hidden_size)      # input_gate
    wg, bg = lin(keys[1], combined, hidden_size)      # cell_gate
    wo, bo = lin(keys[2], combined, hidden_size)      # output_gate
    wout, bout = lin(keys[3], hidden_size, output_size)

    # Split the concatenated-input weights into x- and h- blocks.
    return {
        "wxi": wi[:input_size], "whi": wi[input_size:], "bi": bi,
        "wxg": wg[:input_size], "whg": wg[input_size:], "bg": bg,
        "wxo": wo[:input_size], "who": wo[input_size:], "bo": bo,
        "wout": wout, "bout": bout,
    }


def _reference_forward(x, hidden, p):
    """Pure-JAX replica of the PyTorch forward for correctness checking."""
    seq = x.shape[1]
    h_t = jnp.zeros((1, p["whi"].shape[0]), jnp.float32)
    output = None
    for t in range(seq):
        x_t = x[:, t, :]
        i_t = jax.nn.sigmoid(x_t @ p["wxi"] + h_t @ p["whi"] + p["bi"])
        g_t = jnp.tanh(x_t @ p["wxg"] + h_t @ p["whg"] + p["bg"])
        o_t = jax.nn.sigmoid(x_t @ p["wxo"] + h_t @ p["who"] + p["bo"])
        c_t = i_t * g_t
        h_t = o_t * jnp.tanh(c_t)
        output = h_t @ p["wout"] + p["bout"]
    return output, hidden


if __name__ == "__main__":
    INPUT_SIZE, HIDDEN_SIZE, OUTPUT_SIZE = 16, 32, 8
    SEQ_LEN, BATCH = 8, 1   # module's cat((x_t, h_t)) forces batch == 1

    root = jax.random.PRNGKey(0)
    kx, kh, kp = jax.random.split(root, 3)

    x = jax.random.normal(kx, (BATCH, SEQ_LEN, INPUT_SIZE), jnp.float32)
    hidden_in = jax.random.normal(kh, (1, HIDDEN_SIZE), jnp.float32)
    params = _make_params(kp, INPUT_SIZE, HIDDEN_SIZE, OUTPUT_SIZE)

    # Pack once (outside the per-call path) and jit the whole forward so the
    # reshape / ones-concat wrapper ops fuse into a single dispatch.
    packed = pack_params(params)
    fwd = jax.jit(lstm_noforget2_forward)

    out, hidden_out = fwd(x, hidden_in, packed)
    out = jax.block_until_ready(out)

    ref_out, ref_hidden = _reference_forward(x, hidden_in, params)
    assert out.shape == (1, OUTPUT_SIZE)
    assert jnp.allclose(out, ref_out, atol=1e-5, rtol=1e-5)
    assert jnp.array_equal(hidden_out, ref_hidden)

    print("KERNEL_OK")
</pallas_src>

<mosaic_0001>
module attributes {stable_mosaic.version = 11 : i64} {
  func.func @_lstm_noforget_kernel(%arg0: memref<8x17xf32, #tpu.memory_space<vmem>>, %arg1: memref<17x96xf32, #tpu.memory_space<vmem>>, %arg2: memref<32x96xf32, #tpu.memory_space<vmem>>, %arg3: memref<32x8xf32, #tpu.memory_space<vmem>>, %arg4: memref<1x8xf32, #tpu.memory_space<vmem>>, %arg5: memref<1x8xf32, #tpu.memory_space<vmem>>, %arg6: memref<8x96xf32, #tpu.memory_space<vmem>>) attributes {dimension_semantics = [], scalar_prefetch = 0 : i64, scratch_operands = 1 : i64, tpu.core_type = #tpu.core_type<tc>} {
    %c0 = arith.constant 0 : index
    %c0_0 = arith.constant 0 : index
    %0 = vector.load %arg0[%c0, %c0_0] : memref<8x17xf32, #tpu.memory_space<vmem>>, vector<8x17xf32>
    %c0_1 = arith.constant 0 : index
    %c0_2 = arith.constant 0 : index
    %1 = vector.load %arg1[%c0_1, %c0_2] : memref<17x96xf32, #tpu.memory_space<vmem>>, vector<17x96xf32>
    %cst = arith.constant dense<0.000000e+00> : vector<8x96xf32>
    %2 = tpu.matmul %0, %1, %cst {dimension_numbers = #tpu.dot_dimension_numbers<[1], [0], [0], [1], [0, 0, 1, 1], [], []>} : vector<8x17xf32>, vector<17x96xf32>, vector<8x96xf32> -> vector<8x96xf32>
    %c0_3 = arith.constant 0 : index
    %c0_4 = arith.constant 0 : index
    %3 = vector.load %arg6[%c0_3, %c0_4] : memref<8x96xf32, #tpu.memory_space<vmem>>, vector<8x96xf32>
    tpu.vector_store %arg6[%c0_3, %c0_4], %2 {strides = array<i32>} : memref<8x96xf32, #tpu.memory_space<vmem>>, vector<8x96xf32>,
    %c0_5 = arith.constant 0 : index
    %c0_6 = arith.constant 0 : index
    %4 = vector.load %arg2[%c0_5, %c0_6] : memref<32x96xf32, #tpu.memory_space<vmem>>, vector<32x96xf32>
    %c0_7 = arith.constant 0 : index
    %c0_8 = arith.constant 0 : index
    %5 = vector.load %arg6[%c0_7, %c0_8] : memref<8x96xf32, #tpu.memory_space<vmem>>, vector<1x96xf32>
    %6 = math.tanh %5 : vector<1x96xf32>
    %7 = vector.extract_strided_slice %6 {offsets = [0, 0], sizes = [1, 32], strides = [1, 1]} : vector<1x96xf32> to vector<1x32xf32>
    %cst_9 = arith.constant 5.000000e-01 : f32
    %8 = vector.broadcast %cst_9 : f32 to vector<1x32xf32>
    %9 = arith.mulf %8, %7 : vector<1x32xf32>
    %cst_10 = arith.constant 5.000000e-01 : f32
    %10 = vector.broadcast %cst_10 : f32 to vector<1x32xf32>
    %11 = arith.addf %9, %10 : vector<1x32xf32>
    %12 = vector.extract_strided_slice %6 {offsets = [0, 32], sizes = [1, 32], strides = [1, 1]} : vector<1x96xf32> to vector<1x32xf32>
    %13 = vector.extract_strided_slice %6 {offsets = [0, 64], sizes = [1, 32], strides = [1, 1]} : vector<1x96xf32> to vector<1x32xf32>
    %cst_11 = arith.constant 5.000000e-01 : f32
    %14 = vector.broadcast %cst_11 : f32 to vector<1x32xf32>
    %15 = arith.mulf %14, %13 : vector<1x32xf32>
    %cst_12 = arith.constant 5.000000e-01 : f32
    %16 = vector.broadcast %cst_12 : f32 to vector<1x32xf32>
    %17 = arith.addf %15, %16 : vector<1x32xf32>
    %18 = arith.mulf %11, %12 : vector<1x32xf32>
    %19 = math.tanh %18 : vector<1x32xf32>
    %20 = arith.mulf %17, %19 : vector<1x32xf32>
    %c1 = arith.constant 1 : index
    %c0_13 = arith.constant 0 : index
    %21 = vector.load %arg6[%c1, %c0_13] : memref<8x96xf32, #tpu.memory_space<vmem>>, vector<1x96xf32>
    %cst_14 = arith.constant dense<0.000000e+00> : vector<1x96xf32>
    %22 = tpu.matmul %20, %4, %cst_14 {dimension_numbers = #tpu.dot_dimension_numbers<[1], [0], [0], [1], [0, 0, 1, 1], [], []>} : vector<1x32xf32>, vector<32x96xf32>, vector<1x96xf32> -> vector<1x96xf32>
    %23 = arith.addf %21, %22 : vector<1x96xf32>
    %24 = math.tanh %23 : vector<1x96xf32>
    %25 = vector.extract_strided_slice %24 {offsets = [0, 0], sizes = [1, 32], strides = [1, 1]} : vector<1x96xf32> to vector<1x32xf32>
    %cst_15 = arith.constant 5.000000e-01 : f32
    %26 = vector.broadcast %cst_15 : f32 to vector<1x32xf32>
    %27 = arith.mulf %26, %25 : vector<1x32xf32>
    %cst_16 = arith.constant 5.000000e-01 : f32
    %28 = vector.broadcast %cst_16 : f32 to vector<1x32xf32>
    %29 = arith.addf %27, %28 : vector<1x32xf32>
    %30 = vector.extract_strided_slice %24 {offsets = [0, 32], sizes = [1, 32], strides = [1, 1]} : vector<1x96xf32> to vector<1x32xf32>
    %31 = vector.extract_strided_slice %24 {offsets = [0, 64], sizes = [1, 32], strides = [1, 1]} : vector<1x96xf32> to vector<1x32xf32>
    %cst_17 = arith.constant 5.000000e-01 : f32
    %32 = vector.broadcast %cst_17 : f32 to vector<1x32xf32>
    %33 = arith.mulf %32, %31 : vector<1x32xf32>
    %cst_18 = arith.constant 5.000000e-01 : f32
    %34 = vector.broadcast %cst_18 : f32 to vector<1x32xf32>
    %35 = arith.addf %33, %34 : vector<1x32xf32>
    %36 = arith.mulf %29, %30 : vector<1x32xf32>
    %37 = math.tanh %36 : vector<1x32xf32>
    %38 = arith.mulf %35, %37 : vector<1x32xf32>
    %c2 = arith.constant 2 : index
    %c0_19 = arith.constant 0 : index
    %39 = vector.load %arg6[%c2, %c0_19] : memref<8x96xf32, #tpu.memory_space<vmem>>, vector<1x96xf32>
    %cst_20 = arith.constant dense<0.000000e+00> : vector<1x96xf32>
    %40 = tpu.matmul %38, %4, %cst_20 {dimension_numbers = #tpu.dot_dimension_numbers<[1], [0], [0], [1], [0, 0, 1, 1], [], []>} : vector<1x32xf32>, vector<32x96xf32>, vector<1x96xf32> -> vector<1x96xf32>
    %41 = arith.addf %39, %40 : vector<1x96xf32>
    %42 = math.tanh %41 : vector<1x96xf32>
    %43 = vector.extract_strided_slice %42 {offsets = [0, 0], sizes = [1, 32], strides = [1, 1]} : vector<1x96xf32> to vector<1x32xf32>
    %cst_21 = arith.constant 5.000000e-01 : f32
    %44 = vector.broadcast %cst_21 : f32 to vector<1x32xf32>
    %45 = arith.mulf %44, %43 : vector<1x32xf32>
    %cst_22 = arith.constant 5.000000e-01 : f32
    %46 = vector.broadcast %cst_22 : f32 to vector<1x32xf32>
    %47 = arith.addf %45, %46 : vector<1x32xf32>
    %48 = vector.extract_strided_slice %42 {offsets = [0, 32], sizes = [1, 32], strides = [1, 1]} : vector<1x96xf32> to vector<1x32xf32>
    %49 = vector.extract_strided_slice %42 {offsets = [0, 64], sizes = [1, 32], strides = [1, 1]} : vector<1x96xf32> to vector<1x32xf32>
    %cst_23 = arith.constant 5.000000e-01 : f32
    %50 = vector.broadcast %cst_23 : f32 to vector<1x32xf32>
    %51 = arith.mulf %50, %49 : vector<1x32xf32>
    %cst_24 = arith.constant 5.000000e-01 : f32
    %52 = vector.broadcast %cst_24 : f32 to vector<1x32xf32>
    %53 = arith.addf %51, %52 : vector<1x32xf32>
    %54 = arith.mulf %47, %48 : vector<1x32xf32>
    %55 = math.tanh %54 : vector<1x32xf32>
    %56 = arith.mulf %53, %55 : vector<1x32xf32>
    %c3 = arith.constant 3 : index
    %c0_25 = arith.constant 0 : index
    %57 = vector.load %arg6[%c3, %c0_25] : memref<8x96xf32, #tpu.memory_space<vmem>>, vector<1x96xf32>
    %cst_26 = arith.constant dense<0.000000e+00> : vector<1x96xf32>
    %58 = tpu.matmul %56, %4, %cst_26 {dimension_numbers = #tpu.dot_dimension_numbers<[1], [0], [0], [1], [0, 0, 1, 1], [], []>} : vector<1x32xf32>, vector<32x96xf32>, vector<1x96xf32> -> vector<1x96xf32>
    %59 = arith.addf %57, %58 : vector<1x96xf32>
    %60 = math.tanh %59 : vector<1x96xf32>
    %61 = vector.extract_strided_slice %60 {offsets = [0, 0], sizes = [1, 32], strides = [1, 1]} : vector<1x96xf32> to vector<1x32xf32>
    %cst_27 = arith.constant 5.000000e-01 : f32
    %62 = vector.broadcast %cst_27 : f32 to vector<1x32xf32>
    %63 = arith.mulf %62, %61 : vector<1x32xf32>
    %cst_28 = arith.constant 5.000000e-01 : f32
    %64 = vector.broadcast %cst_28 : f32 to vector<1x32xf32>
    %65 = arith.addf %63, %64 : vector<1x32xf32>
    %66 = vector.extract_strided_slice %60 {offsets = [0, 32], sizes = [1, 32], strides = [1, 1]} : vector<1x96xf32> to vector<1x32xf32>
    %67 = vector.extract_strided_slice %60 {offsets = [0, 64], sizes = [1, 32], strides = [1, 1]} : vector<1x96xf32> to vector<1x32xf32>
    %cst_29 = arith.constant 5.000000e-01 : f32
    %68 = vector.broadcast %cst_29 : f32 to vector<1x32xf32>
    %69 = arith.mulf %68, %67 : vector<1x32xf32>
    %cst_30 = arith.constant 5.000000e-01 : f32
    %70 = vector.broadcast %cst_30 : f32 to vector<1x32xf32>
    %71 = arith.addf %69, %70 : vector<1x32xf32>
    %72 = arith.mulf %65, %66 : vector<1x32xf32>
    %73 = math.tanh %72 : vector<1x32xf32>
    %74 = arith.mulf %71, %73 : vector<1x32xf32>
    %c4 = arith.constant 4 : index
    %c0_31 = arith.constant 0 : index
    %75 = vector.load %arg6[%c4, %c0_31] : memref<8x96xf32, #tpu.memory_space<vmem>>, vector<1x96xf32>
    %cst_32 = arith.constant dense<0.000000e+00> : vector<1x96xf32>
    %76 = tpu.matmul %74, %4, %cst_32 {dimension_numbers = #tpu.dot_dimension_numbers<[1], [0], [0], [1], [0, 0, 1, 1], [], []>} : vector<1x32xf32>, vector<32x96xf32>, vector<1x96xf32> -> vector<1x96xf32>
    %77 = arith.addf %75, %76 : vector<1x96xf32>
    %78 = math.tanh %77 : vector<1x96xf32>
    %79 = vector.extract_strided_slice %78 {offsets = [0, 0], sizes = [1, 32], strides = [1, 1]} : vector<1x96xf32> to vector<1x32xf32>
    %cst_33 = arith.constant 5.000000e-01 : f32
    %80 = vector.broadcast %cst_33 : f32 to vector<1x32xf32>
    %81 = arith.mulf %80, %79 : vector<1x32xf32>
    %cst_34 = arith.constant 5.000000e-01 : f32
    %82 = vector.broadcast %cst_34 : f32 to vector<1x32xf32>
    %83 = arith.addf %81, %82 : vector<1x32xf32>
    %84 = vector.extract_strided_slice %78 {offsets = [0, 32], sizes = [1, 32], strides = [1, 1]} : vector<1x96xf32> to vector<1x32xf32>
    %85 = vector.extract_strided_slice %78 {offsets = [0, 64], sizes = [1, 32], strides = [1, 1]} : vector<1x96xf32> to vector<1x32xf32>
    %cst_35 = arith.constant 5.000000e-01 : f32
    %86 = vector.broadcast %cst_35 : f32 to vector<1x32xf32>
    %87 = arith.mulf %86, %85 : vector<1x32xf32>
    %cst_36 = arith.constant 5.000000e-01 : f32
    %88 = vector.broadcast %cst_36 : f32 to vector<1x32xf32>
    %89 = arith.addf %87, %88 : vector<1x32xf32>
    %90 = arith.mulf %83, %84 : vector<1x32xf32>
    %91 = math.tanh %90 : vector<1x32xf32>
    %92 = arith.mulf %89, %91 : vector<1x32xf32>
    %c5 = arith.constant 5 : index
    %c0_37 = arith.constant 0 : index
    %93 = vector.load %arg6[%c5, %c0_37] : memref<8x96xf32, #tpu.memory_space<vmem>>, vector<1x96xf32>
    %cst_38 = arith.constant dense<0.000000e+00> : vector<1x96xf32>
    %94 = tpu.matmul %92, %4, %cst_38 {dimension_numbers = #tpu.dot_dimension_numbers<[1], [0], [0], [1], [0, 0, 1, 1], [], []>} : vector<1x32xf32>, vector<32x96xf32>, vector<1x96xf32> -> vector<1x96xf32>
    %95 = arith.addf %93, %94 : vector<1x96xf32>
    %96 = math.tanh %95 : vector<1x96xf32>
    %97 = vector.extract_strided_slice %96 {offsets = [0, 0], sizes = [1, 32], strides = [1, 1]} : vector<1x96xf32> to vector<1x32xf32>
    %cst_39 = arith.constant 5.000000e-01 : f32
    %98 = vector.broadcast %cst_39 : f32 to vector<1x32xf32>
    %99 = arith.mulf %98, %97 : vector<1x32xf32>
    %cst_40 = arith.constant 5.000000e-01 : f32
    %100 = vector.broadcast %cst_40 : f32 to vector<1x32xf32>
    %101 = arith.addf %99, %100 : vector<1x32xf32>
    %102 = vector.extract_strided_slice %96 {offsets = [0, 32], sizes = [1, 32], strides = [1, 1]} : vector<1x96xf32> to vector<1x32xf32>
    %103 = vector.extract_strided_slice %96 {offsets = [0, 64], sizes = [1, 32], strides = [1, 1]} : vector<1x96xf32> to vector<1x32xf32>
    %cst_41 = arith.constant 5.000000e-01 : f32
    %104 = vector.broadcast %cst_41 : f32 to vector<1x32xf32>
    %105 = arith.mulf %104, %103 : vector<1x32xf32>
    %cst_42 = arith.constant 5.000000e-01 : f32
    %106 = vector.broadcast %cst_42 : f32 to vector<1x32xf32>
    %107 = arith.addf %105, %106 : vector<1x32xf32>
    %108 = arith.mulf %101, %102 : vector<1x32xf32>
    %109 = math.tanh %108 : vector<1x32xf32>
    %110 = arith.mulf %107, %109 : vector<1x32xf32>
    %c6 = arith.constant 6 : index
    %c0_43 = arith.constant 0 : index
    %111 = vector.load %arg6[%c6, %c0_43] : memref<8x96xf32, #tpu.memory_space<vmem>>, vector<1x96xf32>
    %cst_44 = arith.constant dense<0.000000e+00> : vector<1x96xf32>
    %112 = tpu.matmul %110, %4, %cst_44 {dimension_numbers = #tpu.dot_dimension_numbers<[1], [0], [0], [1], [0, 0, 1, 1], [], []>} : vector<1x32xf32>, vector<32x96xf32>, vector<1x96xf32> -> vector<1x96xf32>
    %113 = arith.addf %111, %112 : vector<1x96xf32>
    %114 = math.tanh %113 : vector<1x96xf32>
    %115 = vector.extract_strided_slice %114 {offsets = [0, 0], sizes = [1, 32], strides = [1, 1]} : vector<1x96xf32> to vector<1x32xf32>
    %cst_45 = arith.constant 5.000000e-01 : f32
    %116 = vector.broadcast %cst_45 : f32 to vector<1x32xf32>
    %117 = arith.mulf %116, %115 : vector<1x32xf32>
    %cst_46 = arith.constant 5.000000e-01 : f32
    %118 = vector.broadcast %cst_46 : f32 to vector<1x32xf32>
    %119 = arith.addf %117, %118 : vector<1x32xf32>
    %120 = vector.extract_strided_slice %114 {offsets = [0, 32], sizes = [1, 32], strides = [1, 1]} : vector<1x96xf32> to vector<1x32xf32>
    %121 = vector.extract_strided_slice %114 {offsets = [0, 64], sizes = [1, 32], strides = [1, 1]} : vector<1x96xf32> to vector<1x32xf32>
    %cst_47 = arith.constant 5.000000e-01 : f32
    %122 = vector.broadcast %cst_47 : f32 to vector<1x32xf32>
    %123 = arith.mulf %122, %121 : vector<1x32xf32>
    %cst_48 = arith.constant 5.000000e-01 : f32
    %124 = vector.broadcast %cst_48 : f32 to vector<1x32xf32>
    %125 = arith.addf %123, %124 : vector<1x32xf32>
    %126 = arith.mulf %119, %120 : vector<1x32xf32>
    %127 = math.tanh %126 : vector<1x32xf32>
    %128 = arith.mulf %125, %127 : vector<1x32xf32>
    %c7 = arith.constant 7 : index
    %c0_49 = arith.constant 0 : index
    %129 = vector.load %arg6[%c7, %c0_49] : memref<8x96xf32, #tpu.memory_space<vmem>>, vector<1x96xf32>
    %cst_50 = arith.constant dense<0.000000e+00> : vector<1x96xf32>
    %130 = tpu.matmul %128, %4, %cst_50 {dimension_numbers = #tpu.dot_dimension_numbers<[1], [0], [0], [1], [0, 0, 1, 1], [], []>} : vector<1x32xf32>, vector<32x96xf32>, vector<1x96xf32> -> vector<1x96xf32>
    %131 = arith.addf %129, %130 : vector<1x96xf32>
    %132 = math.tanh %131 : vector<1x96xf32>
    %133 = vector.extract_strided_slice %132 {offsets = [0, 0], sizes = [1, 32], strides = [1, 1]} : vector<1x96xf32> to vector<1x32xf32>
    %cst_51 = arith.constant 5.000000e-01 : f32
    %134 = vector.broadcast %cst_51 : f32 to vector<1x32xf32>
    %135 = arith.mulf %134, %133 : vector<1x32xf32>
    %cst_52 = arith.constant 5.000000e-01 : f32
    %136 = vector.broadcast %cst_52 : f32 to vector<1x32xf32>
    %137 = arith.addf %135, %136 : vector<1x32xf32>
    %138 = vector.extract_strided_slice %132 {offsets = [0, 32], sizes = [1, 32], strides = [1, 1]} : vector<1x96xf32> to vector<1x32xf32>
    %139 = vector.extract_strided_slice %132 {offsets = [0, 64], sizes = [1, 32], strides = [1, 1]} : vector<1x96xf32> to vector<1x32xf32>
    %cst_53 = arith.constant 5.000000e-01 : f32
    %140 = vector.broadcast %cst_53 : f32 to vector<1x32xf32>
    %141 = arith.mulf %140, %139 : vector<1x32xf32>
    %cst_54 = arith.constant 5.000000e-01 : f32
    %142 = vector.broadcast %cst_54 : f32 to vector<1x32xf32>
    %143 = arith.addf %141, %142 : vector<1x32xf32>
    %144 = arith.mulf %137, %138 : vector<1x32xf32>
    %145 = math.tanh %144 : vector<1x32xf32>
    %146 = arith.mulf %143, %145 : vector<1x32xf32>
    %c0_55 = arith.constant 0 : index
    %c0_56 = arith.constant 0 : index
    %147 = vector.load %arg3[%c0_55, %c0_56] : memref<32x8xf32, #tpu.memory_space<vmem>>, vector<32x8xf32>
    %cst_57 = arith.constant dense<0.000000e+00> : vector<1x8xf32>
    %148 = tpu.matmul %146, %147, %cst_57 {dimension_numbers = #tpu.dot_dimension_numbers<[1], [0], [0], [1], [0, 0, 1, 1], [], []>} : vector<1x32xf32>, vector<32x8xf32>, vector<1x8xf32> -> vector<1x8xf32>
    %c0_58 = arith.constant 0 : index
    %c0_59 = arith.constant 0 : index
    %149 = vector.load %arg4[%c0_58, %c0_59] : memref<1x8xf32, #tpu.memory_space<vmem>>, vector<1x8xf32>
    %150 = arith.addf %148, %149 : vector<1x8xf32>
    %c0_60 = arith.constant 0 : index
    %c0_61 = arith.constant 0 : index
    %151 = vector.load %arg5[%c0_60, %c0_61] : memref<1x8xf32, #tpu.memory_space<vmem>>, vector<1x8xf32>
    tpu.vector_store %arg5[%c0_60, %c0_61], %150 {strides = array<i32>} : memref<1x8xf32, #tpu.memory_space<vmem>>, vector<1x8xf32>,
    return
  }
}

</mosaic_0001>

<bundles_post_ra>
// kernel: lstm_noforget2_forward.1
= control target key start
LH: loop header
LB: loop body
LE: loop exit
PB: predicated region body
PF: predicated region fallthrough
CT: control target
= control target key end

     0   :  { %v1122_v2 = vmov 0.0|0.0   ;;  %s1295_s0 = inlined_call_operand.vmem [shape: f32[8,17], index: 0, kind: input, shape index: {}]   ;;  %s1296_s1 = inlined_call_operand.vmem [shape: f32[17,96], index: 1, kind: input, shape index: {}]   ;;  %s1297_s2 = inlined_call_operand.vmem [shape: f32[32,96], index: 2, kind: input, shape index: {}]   ;;  %s1298_s3 = inlined_call_operand.vmem [shape: f32[32,8], index: 3, kind: input, shape index: {}]   ;;  %s1299_s4 = inlined_call_operand.vmem [shape: f32[1,8], index: 4, kind: input, shape index: {}]   ;;  %s1300_s5 = inlined_call_operand.hbm [shape: f32[1,8], index: 5, kind: output, shape index: {}]  }
   0x1   :  { %v22_v0 = vld [vmem:[%s1296_s1] sm:$0xff]  ;;  %v23_v1 = vld [vmem:[%s1296_s1 + $0x8] sm:$0xff]  ;;  %1009 = vmatprep.subr.bf16.mxu0 %v1122_v2  ;;  %1012 = vmatprep.subr.bf16.mxu1 %v1122_v2 }
   0x2   :  { %v1010_v3 = vpack.c.bf16 %v23_v1, %v22_v0 }
   0x3   :  { %10 = vsyncpa [#allocation4], 0  ;;  %vm1123_vm0 = vmmov 0   ;;  %v1124_v4 = vmov 0.0   ;;  %v24_v5 = vld [vmem:[%s1296_s1 + $0x10] sm:$0x1] }
   0x4   :  { %918 = vmatprep.mubr.msk.f32.mxu0 %vm1123_vm0, %v1124_v4  ;;  %929 = vmatprep.mubr.msk.f32.mxu1 %vm1123_vm0, %v1124_v4  ;;  %vm29_vm1 = vcmask 1040384   ;;  %v21_v6 = vld [vmem:[%s1295_s0] sm:$0xff]  ;;  %vm25_vm2 = vcmask 138240   ;;  %vm103_vm3 = vcmask 785408   ;;  %s1125_s1 = smov 96   ;;  %v106_v16 = vld [vmem:[%s1297_s2 + $0x8] sm:$0xff] }
   0x5   :  { %1011 = vmatpush3.bf16.msra.mxu0 %v1010_v3  ;;  %v105_v15 = vld [vmem:[%s1297_s2] sm:$0xff]  ;;  %v107_v17 = vld [vmem:[%s1297_s2 + $0x10] sm:$0xff]  ;;  %v108_v19 = vld [vmem:[%s1297_s2 + $0x18] sm:$0xff]  ;;  %s1126_s2 = smov 64   ;;  %vm128_vm4 = vcmask 261120   ;;  %vm842_vm5 = vcmask 57344  }
   0x6   :  { %916 = vmatprep.subr.mxu0 %v1124_v4  ;;  %v1190_v18 = vpack.c.bf16 %v106_v16, %v105_v15  ;;  %v1196_v20 = vpack.c.bf16 %v108_v19, %v107_v17 }
   0x8   :  { %1014 = vmatpush3.bf16.msra.mxu1 %v1190_v18 }
   0x9   :  { %917 = vmatpush3.msk.msra.mxu0 %vm29_vm1, %v24_v5  ;;  %1015 = vmatprep.subr.bf16.mxu1 %v1122_v2 }
   0xa   :  { %919 = vmatmul.mubr.msk.f32.vlgmr.msra.gmra.mrb[0].mxu0 %vm25_vm2, %v21_v6  ;;  %1018 = vmatprep.subr.bf16.mxu0 %v1122_v2 }
   0xb   :  { %940 = vmatprep.mubr.msk.f32.mxu0 %vm1123_vm0, %v1124_v4  ;;  %1020 = vmatpush3.bf16.msra.mxu0 %v1190_v18 }
   0xc   :  { %1021 = vmatprep.subr.bf16.mxu0 %v1122_v2  ;;  %1017 = vmatpush3.bf16.msra.mxu1 %v1196_v20 }
   0xd   :  { %1024 = vmatprep.subr.bf16.mxu1 %v1122_v2 }
   0xf   :  { %1023 = vmatpush3.bf16.msra.mxu0 %v1196_v20 }
  0x10   :  { %1030 = vmatprep.subr.bf16.mxu0 %v1122_v2 }
  0xdd   :  { %v99_v7 = vpop.f32.mrb[0].mxu0 }
  0xde   :  { %104 = vst.msk [vmem:[#allocation2] sm:$0xff] %vm103_vm3, %v99_v7  ;;  %v920_v8 = vpop.f32.mrb[1].mxu0 }
  0xe5   :  { %v109_v9 = vld [vmem:[#allocation2] sm:$0x1]  ;;  %v124_v25 = vld [vmem:[#allocation2 + $0x1] sm:$0x1]  ;;  %v216_v38 = vld [vmem:[#allocation2 + $0x2] sm:$0x1] }
  0xe6   :  { %1066 = vtanh.f32 %v109_v9  ;;  %v307_v51 = vld [vmem:[#allocation2 + $0x3] sm:$0x1]  ;;  %v398_v0 = vld [vmem:[#allocation2 + $0x4] sm:$0x1]  ;;  %v489_v15 = vld [vmem:[#allocation2 + $0x5] sm:$0x1] }
  0xf0   :  { %v1067_v10 = vpop.eup %1066 }
  0xf1   :  { %114 = vrot.lane.b32.xlu0 %v1067_v10, %s1125_s1  ;;  %v111_v11 = vmul.f32 0.5, %v1067_v10 }
  0xf3   :  { %v112_v12 = vadd.f32 0.5, %v111_v11 }
 0x163   :  { %v115_v13 = vpop.permute.xlu0 %114 }
 0x164   :  { %v117_v14 = vmul.f32 %v115_v13, %v112_v12 }
 0x166   :  { %1068 = vtanh.f32 %v117_v14 }
 0x170   :  { %v1069_v21 = vpop.eup %1068 }
 0x171   :  { %120 = vrot.lane.b32.xlu0 %v1069_v21, %s1126_s2 }
 0x1e3   :  { %v121_v22 = vpop.permute.xlu0 %120 }
 0x1e4   :  { %v123_v23 = vmul.f32 %v121_v22, %v112_v12 }
 0x1e6   :  { %126 = vrot.lane.b32.xlu1 %v123_v23, %s1126_s2 }
 0x258   :  { %v127_v24 = vpop.permute.xlu1 %126 }
 0x259   :  { %930 = vmatmul.mubr.msk.f32.vlgmr.msra.gmra.mrb[0].mxu1 %vm128_vm4, %v127_v24 }
 0x25a   :  { %1026 = vmatpush3.bf16.msra.mxu1 %v1190_v18  ;;  %951 = vmatprep.mubr.msk.f32.mxu1 %vm1123_vm0, %v1124_v4 }
 0x25b   :  { %1027 = vmatprep.subr.bf16.mxu1 %v1122_v2 }
 0x25e   :  { %1029 = vmatpush3.bf16.msra.mxu1 %v1196_v20 }
 0x25f   :  { %1036 = vmatprep.subr.bf16.mxu1 %v1122_v2 }
 0x32c   :  { %v197_v26 = vpop.f32.mrb[0].mxu1 }
 0x32d   :  { %v201_v27 = vadd.f32 %v197_v26, %v124_v25  ;;  %v931_v28 = vpop.f32.mrb[1].mxu1 }
 0x32e   :  { %v580_v28 = vld [vmem:[#allocation2 + $0x6] sm:$0x1] }
 0x32f   :  { %1070 = vtanh.f32 %v201_v27 }
 0x339   :  { %v1071_v29 = vpop.eup %1070 }
 0x33a   :  { %206 = vrot.lane.b32.xlu1 %v1071_v29, %s1125_s1  ;;  %v203_v30 = vmul.f32 0.5, %v1071_v29 }
 0x33c   :  { %v204_v31 = vadd.f32 0.5, %v203_v30 }
 0x3ac   :  { %v207_v32 = vpop.permute.xlu1 %206 }
 0x3ad   :  { %v209_v33 = vmul.f32 %v207_v32, %v204_v31 }
 0x3af   :  { %1072 = vtanh.f32 %v209_v33 }
 0x3b9   :  { %v1073_v34 = vpop.eup %1072 }
 0x3ba   :  { %212 = vrot.lane.b32.xlu0 %v1073_v34, %s1126_s2 }
 0x42c   :  { %v213_v35 = vpop.permute.xlu0 %212 }
 0x42d   :  { %v215_v36 = vmul.f32 %v213_v35, %v204_v31 }
 0x42f   :  { %218 = vrot.lane.b32.xlu1 %v215_v36, %s1126_s2 }
 0x4a1   :  { %v219_v37 = vpop.permute.xlu1 %218 }
 0x4a2   :  { %941 = vmatmul.mubr.msk.f32.vlgmr.msra.gmra.mrb[2].mxu0 %vm128_vm4, %v219_v37 }
 0x4a3   :  { %1032 = vmatpush3.bf16.msra.mxu0 %v1190_v18  ;;  %962 = vmatprep.mubr.msk.f32.mxu0 %vm1123_vm0, %v1124_v4 }
 0x4a4   :  { %1033 = vmatprep.subr.bf16.mxu0 %v1122_v2 }
 0x4a7   :  { %1035 = vmatpush3.bf16.msra.mxu0 %v1196_v20 }
 0x4a8   :  { %1042 = vmatprep.subr.bf16.mxu0 %v1122_v2 }
 0x575   :  { %v288_v39 = vpop.f32.mrb[2].mxu0 }
 0x576   :  { %v292_v40 = vadd.f32 %v288_v39, %v216_v38  ;;  %v942_v41 = vpop.f32.mrb[3].mxu0 }
 0x578   :  { %1074 = vtanh.f32 %v292_v40  ;;  %v671_v40 = vld [vmem:[#allocation2 + $0x7] sm:$0x1] }
 0x582   :  { %v1075_v42 = vpop.eup %1074 }
 0x583   :  { %297 = vrot.lane.b32.xlu0 %v1075_v42, %s1125_s1  ;;  %v294_v43 = vmul.f32 0.5, %v1075_v42 }
 0x585   :  { %v295_v44 = vadd.f32 0.5, %v294_v43 }
 0x5f5   :  { %v298_v45 = vpop.permute.xlu0 %297 }
 0x5f6   :  { %v300_v46 = vmul.f32 %v298_v45, %v295_v44 }
 0x5f8   :  { %1076 = vtanh.f32 %v300_v46 }
 0x602   :  { %v1077_v47 = vpop.eup %1076 }
 0x603   :  { %303 = vrot.lane.b32.xlu1 %v1077_v47, %s1126_s2 }
 0x675   :  { %v304_v48 = vpop.permute.xlu1 %303 }
 0x676   :  { %v306_v49 = vmul.f32 %v304_v48, %v295_v44 }
 0x678   :  { %309 = vrot.lane.b32.xlu0 %v306_v49, %s1126_s2  ;;  %v762_v49 = vld [vmem:[%s1298_s3] sm:$0xff] }
 0x6ea   :  { %v310_v50 = vpop.permute.xlu0 %309 }
 0x6eb   :  { %952 = vmatmul.mubr.msk.f32.vlgmr.msra.gmra.mrb[2].mxu1 %vm128_vm4, %v310_v50  ;;  %v763_v50 = vld [vmem:[%s1298_s3 + $0x8] sm:$0xff] }
 0x6ec   :  { %1038 = vmatpush3.bf16.msra.mxu1 %v1190_v18  ;;  %973 = vmatprep.mubr.msk.f32.mxu1 %vm1123_vm0, %v1124_v4 }
 0x6ed   :  { %1039 = vmatprep.subr.bf16.mxu1 %v1122_v2 }
 0x6f0   :  { %1041 = vmatpush3.bf16.msra.mxu1 %v1196_v20 }
 0x6f1   :  { %1048 = vmatprep.subr.bf16.mxu1 %v1122_v2 }
 0x7be   :  { %v379_v52 = vpop.f32.mrb[2].mxu1 }
 0x7bf   :  { %v383_v53 = vadd.f32 %v379_v52, %v307_v51  ;;  %v953_v54 = vpop.f32.mrb[3].mxu1  ;;  %v764_v51 = vld [vmem:[%s1298_s3 + $0x10] sm:$0xff]  ;;  %v1055_v52 = vpack.c.bf16 %v763_v50, %v762_v49 }
 0x7c1   :  { %1078 = vtanh.f32 %v383_v53  ;;  %v765_v53 = vld [vmem:[%s1298_s3 + $0x18] sm:$0xff]  ;;  %s1127_s3 = smov [#allocation3]  }
 0x7c2   :  { %v1058_v54 = vpack.c.bf16 %v765_v53, %v764_v51  ;;  %s850_s18 = sshll.u32 %s1127_s3, 4  ;;  %s851_s18 = int_to_ptr.vmem [resolvable:$true] %s850_s18 }
 0x7c3   :  { %s1098_s19 = scalar_lea.vmem %s851_s18, 16  ;;  %s1102_s20 = scalar_lea.vmem %s851_s18, 32 }
 0x7c4   :  { %p1099_p0 = scmp.ne.s32.totalorder %s851_s18, %s1098_s19  ;;  %p1103_p1 = scmp.lt.s32.totalorder %s851_s18, %s851_s18 }
 0x7c5   :  { %p1104_p2 = scmp.lt.s32.totalorder %s1102_s20, %s1098_s19 }
 0x7c7   :  { %p1105_p3 = por %p1104_p2, %p1103_p1 }
 0x7c9   :  { %p1106_p4 = pnand %p1105_p3, %p1099_p0 }
 0x7cb   :  { %v1079_v55 = vpop.eup %1078 }
 0x7cc   :  { %388 = vrot.lane.b32.xlu1 %v1079_v55, %s1125_s1  ;;  %v385_v56 = vmul.f32 0.5, %v1079_v55 }
 0x7ce   :  { %v386_v57 = vadd.f32 0.5, %v385_v56 }
 0x83e   :  { %v389_v58 = vpop.permute.xlu1 %388 }
 0x83f   :  { %v391_v59 = vmul.f32 %v389_v58, %v386_v57 }
 0x841   :  { %1080 = vtanh.f32 %v391_v59  ;;  %v766_v59 = vld [vmem:[%s1299_s4] sm:$0x1] }
 0x84b   :  { %v1081_v60 = vpop.eup %1080 }
 0x84c   :  { %394 = vrot.lane.b32.xlu0 %v1081_v60, %s1126_s2 }
 0x8be   :  { %v395_v61 = vpop.permute.xlu0 %394 }
 0x8bf   :  { %v397_v62 = vmul.f32 %v395_v61, %v386_v57 }
 0x8c1   :  { %400 = vrot.lane.b32.xlu1 %v397_v62, %s1126_s2 }
 0x933   :  { %v401_v63 = vpop.permute.xlu1 %400 }
 0x934   :  { %963 = vmatmul.mubr.msk.f32.vlgmr.msra.gmra.mrb[4].mxu0 %vm128_vm4, %v401_v63 }
 0x935   :  { %1044 = vmatpush3.bf16.msra.mxu0 %v1190_v18  ;;  %984 = vmatprep.mubr.msk.f32.mxu0 %vm1123_vm0, %v1124_v4 }
 0x936   :  { %1045 = vmatprep.subr.bf16.mxu0 %v1122_v2 }
 0x939   :  { %1047 = vmatpush3.bf16.msra.mxu0 %v1196_v20 }
 0x93a   :  { %1054 = vmatprep.subr.bf16.mxu0 %v1122_v2 }
 0xa07   :  { %v470_v1 = vpop.f32.mrb[4].mxu0 }
 0xa08   :  { %v474_v3 = vadd.f32 %v470_v1, %v398_v0  ;;  %v964_v5 = vpop.f32.mrb[5].mxu0 }
 0xa0a   :  { %1082 = vtanh.f32 %v474_v3 }
 0xa14   :  { %v1083_v6 = vpop.eup %1082 }
 0xa15   :  { %479 = vrot.lane.b32.xlu0 %v1083_v6, %s1125_s1  ;;  %v476_v7 = vmul.f32 0.5, %v1083_v6 }
 0xa17   :  { %v477_v8 = vadd.f32 0.5, %v476_v7 }
 0xa87   :  { %v480_v9 = vpop.permute.xlu0 %479 }
 0xa88   :  { %v482_v10 = vmul.f32 %v480_v9, %v477_v8 }
 0xa8a   :  { %1084 = vtanh.f32 %v482_v10 }
 0xa94   :  { %v1085_v11 = vpop.eup %1084 }
 0xa95   :  { %485 = vrot.lane.b32.xlu1 %v1085_v11, %s1126_s2 }
 0xb07   :  { %v486_v12 = vpop.permute.xlu1 %485 }
 0xb08   :  { %v488_v13 = vmul.f32 %v486_v12, %v477_v8 }
 0xb0a   :  { %491 = vrot.lane.b32.xlu0 %v488_v13, %s1126_s2 }
 0xb7c   :  { %v492_v14 = vpop.permute.xlu0 %491 }
 0xb7d   :  { %974 = vmatmul.mubr.msk.f32.vlgmr.msra.gmra.mrb[4].mxu1 %vm128_vm4, %v492_v14 }
 0xb7e   :  { %1050 = vmatpush3.bf16.msra.mxu1 %v1190_v18  ;;  %995 = vmatprep.mubr.msk.f32.mxu1 %vm1123_vm0, %v1124_v4 }
 0xb7f   :  { %1051 = vmatprep.subr.bf16.mxu1 %v1122_v2 }
 0xb82   :  { %1053 = vmatpush3.bf16.msra.mxu1 %v1196_v20 }
 0xc50   :  { %v561_v16 = vpop.f32.mrb[4].mxu1 }
 0xc51   :  { %v565_v17 = vadd.f32 %v561_v16, %v489_v15  ;;  %v975_v19 = vpop.f32.mrb[5].mxu1 }
 0xc53   :  { %1086 = vtanh.f32 %v565_v17 }
 0xc5d   :  { %v1087_v21 = vpop.eup %1086 }
 0xc5e   :  { %570 = vrot.lane.b32.xlu1 %v1087_v21, %s1125_s1  ;;  %v567_v22 = vmul.f32 0.5, %v1087_v21 }
 0xc60   :  { %v568_v23 = vadd.f32 0.5, %v567_v22 }
 0xcd0   :  { %v571_v24 = vpop.permute.xlu1 %570 }
 0xcd1   :  { %v573_v25 = vmul.f32 %v571_v24, %v568_v23 }
 0xcd3   :  { %1088 = vtanh.f32 %v573_v25 }
 0xcdd   :  { %v1089_v18 = vpop.eup %1088 }
 0xcde   :  { %576 = vrot.lane.b32.xlu0 %v1089_v18, %s1126_s2 }
 0xd50   :  { %v577_v26 = vpop.permute.xlu0 %576 }
 0xd51   :  { %v579_v27 = vmul.f32 %v577_v26, %v568_v23 }
 0xd53   :  { %582 = vrot.lane.b32.xlu1 %v579_v27, %s1126_s2 }
 0xdc5   :  { %v583_v20 = vpop.permute.xlu1 %582 }
 0xdc6   :  { %985 = vmatmul.mubr.msk.f32.vlgmr.msra.gmra.mrb[6].mxu0 %vm128_vm4, %v583_v20 }
 0xdc7   :  { %1006 = vmatprep.mubr.msk.f32.mxu0 %vm1123_vm0, %v1124_v4  ;;  %1056 = vmatpush3.bf16.msra.mxu0 %v1055_v52 }
 0xdc8   :  { %1057 = vmatprep.subr.bf16.mxu0 %v1122_v2 }
 0xdcb   :  { %1059 = vmatpush3.bf16.msra.mxu0 %v1058_v54 }
 0xe99   :  { %v652_v29 = vpop.f32.mrb[6].mxu0 }
 0xe9a   :  { %v656_v30 = vadd.f32 %v652_v29, %v580_v28  ;;  %v986_v31 = vpop.f32.mrb[7].mxu0 }
 0xe9c   :  { %1090 = vtanh.f32 %v656_v30 }
 0xea6   :  { %v1091_v32 = vpop.eup %1090 }
 0xea7   :  { %661 = vrot.lane.b32.xlu0 %v1091_v32, %s1125_s1  ;;  %v658_v33 = vmul.f32 0.5, %v1091_v32 }
 0xea9   :  { %v659_v34 = vadd.f32 0.5, %v658_v33 }
 0xf19   :  { %v662_v35 = vpop.permute.xlu0 %661 }
 0xf1a   :  { %v664_v36 = vmul.f32 %v662_v35, %v659_v34 }
 0xf1c   :  { %1092 = vtanh.f32 %v664_v36 }
 0xf26   :  { %v1093_v37 = vpop.eup %1092 }
 0xf27   :  { %667 = vrot.lane.b32.xlu1 %v1093_v37, %s1126_s2 }
 0xf99   :  { %v668_v38 = vpop.permute.xlu1 %667 }
 0xf9a   :  { %v670_v39 = vmul.f32 %v668_v38, %v659_v34 }
 0xf9c   :  { %673 = vrot.lane.b32.xlu0 %v670_v39, %s1126_s2 }
0x100e   :  { %v674_v4 = vpop.permute.xlu0 %673 }
0x100f   :  { %996 = vmatmul.mubr.msk.f32.vlgmr.msra.gmra.mrb[6].mxu1 %vm128_vm4, %v674_v4 }
0x10e2   :  { %v743_v41 = vpop.f32.mrb[6].mxu1 }
0x10e3   :  { %v747_v42 = vadd.f32 %v743_v41, %v671_v40  ;;  %v997_v43 = vpop.f32.mrb[7].mxu1 }
0x10e5   :  { %1094 = vtanh.f32 %v747_v42 }
0x10ef   :  { %v1095_v44 = vpop.eup %1094 }
0x10f0   :  { %752 = vrot.lane.b32.xlu1 %v1095_v44, %s1125_s1  ;;  %v749_v45 = vmul.f32 0.5, %v1095_v44 }
0x10f2   :  { %v750_v46 = vadd.f32 0.5, %v749_v45 }
0x1162   :  { %v753_v47 = vpop.permute.xlu1 %752 }
0x1163   :  { %v755_v48 = vmul.f32 %v753_v47, %v750_v46 }
0x1165   :  { %1096 = vtanh.f32 %v755_v48 }
0x116f   :  { %v1097_v55 = vpop.eup %1096 }
0x1170   :  { %758 = vrot.lane.b32.xlu0 %v1097_v55, %s1126_s2 }
0x11e2   :  { %v759_v56 = vpop.permute.xlu0 %758 }
0x11e3   :  { %v761_v57 = vmul.f32 %v759_v56, %v750_v46 }
0x11e5   :  { %768 = vrot.lane.b32.xlu1 %v761_v57, %s1126_s2 }
0x1257   :  { %v769_v58 = vpop.permute.xlu1 %768 }
0x1258   :  { %1007 = vmatmul.mubr.msk.f32.vlgmr.msra.gmra.mrb[8].mxu0 %vm128_vm4, %v769_v58 }
0x132b   :  { %v838_v60 = vpop.f32.mrb[8].mxu0 }
0x132c   :  { %v839_v2 = vadd.f32 %v838_v60, %v766_v59  ;;  %v1008_v61 = vpop.f32.mrb[9].mxu0 }
0x132e   :  { %843 = vst.msk [vmem:[#allocation3] sm:$0x1] %vm842_vm5, %v839_v2 }
0x132f   :  { %1109 = shalt.err (!%p1106_p4)
}
0x1330   :  { %s1110_s4 = scalar_lea.hbm %s1300_s5, 16 }
0x1331   :  { %p1111_p5 = scmp.ne.s32.totalorder %s1300_s5, %s1110_s4  ;;  %p1114_p6 = scmp.lt.u32.totalorder %s1110_s4, %s1300_s5 }
0x1333   :  { %p1116_p7 = pnand %p1114_p6, %p1111_p5 }
0x1335   :  { %1119 = shalt.err (!%p1116_p7)
}
0x1336   :  { %853 = dma.vmem_to_hbm [thread:$0]  %s851_s18, 16, %s1300_s5, [#allocation4]  }
0x1337   :  { %1120 = dma.done.wait [#allocation4], 16  }
0x1338   :  { %1121 = vsyncadd [#allocation4], 4294967280 }
0x1339   :  { %857 = vsyncpa [#allocation4], 1 }

</bundles_post_ra>
